<compile_context>
chip_gen: v5e
topology: v5e:2x2
jax: 0.10.0
libtpu: 0.0.40
codegen_flags: <defaults>
</compile_context>

<pallas_src>
import functools

import jax
import jax.numpy as jnp
from jax.experimental import pallas as pl
from jax.experimental.pallas import tpu as pltpu


_MIB = 1024 * 1024


# ---------------------------------------------------------------------------
# Generation-aware VMEM budgeting.
# ---------------------------------------------------------------------------
def _vmem_capacity_bytes():
    """Physical per-core VMEM (v5e/v6e: 128 MiB, v7x: 64 MiB)."""
    try:
        cap = getattr(pltpu.get_tpu_info(), "vmem_capacity_bytes", None)
        if cap:
            return int(cap)
    except Exception:
        pass
    try:
        kind = jax.devices()[0].device_kind.lower()
        if "v7" in kind:
            return 64 * _MIB
        if "v5" in kind or "v6" in kind:
            return 128 * _MIB
    except Exception:
        pass
    return 64 * _MIB  # conservative fallback


def _vmem_limit_bytes():
    # ~75% of physical VMEM: 48 MiB on v7x, 96 MiB on v5e/v6e.
    return int(_vmem_capacity_bytes()) * 3 // 4


# ---------------------------------------------------------------------------
# Fused whole-forward kernel (small / medium graphs: everything VMEM resident).
# ---------------------------------------------------------------------------
def _fused_gnn_kernel(ee_ref, er_ref, we_ref, wr_ref, out_ref, *, depth, h2):
    ee = ee_ref[...]                                  # [N, N], reused every step
    # First layer as one 2H-wide matmul pair (zero-padded weights):
    #   relu(cat([ee @ E, er @ R], -1)) == relu(ee @ [E|0] + er @ [0|R])
    h = jnp.maximum(
        jnp.dot(ee, we_ref[...], preferred_element_type=jnp.float32)
        + jnp.dot(er_ref[...], wr_ref[...], preferred_element_type=jnp.float32),
        0.0)                                          # [N, 2H] f32
    out_ref[:, 0:h2] = h.astype(out_ref.dtype)
    for d in range(1, depth):
        h = jnp.maximum(
            jnp.dot(ee, h.astype(ee.dtype), preferred_element_type=jnp.float32),
            0.0)
        # Store the slab as soon as it is produced (static slice): only one
        # slab is live at a time, no final lane concatenation.
        out_ref[:, d * h2:(d + 1) * h2] = h.astype(out_ref.dtype)


def fused_gnn_forward(ent_ent, ent_rel, we_pad, wr_pad, *, depth, vmem_limit):
    """Whole SimpleGNN forward in one grid-less pallas_call (VMEM resident,
    single-buffered operands)."""
    n, n2 = ent_ent.shape
    assert n == n2, ent_ent.shape
    r = ent_rel.shape[1]
    h2 = we_pad.shape[1]
    assert we_pad.shape == (n, h2) and wr_pad.shape == (r, h2)
    out_w = h2 * depth
    itemsize = jnp.dtype(ent_ent.dtype).itemsize

    flops = 2 * n * n * h2 + 2 * n * r * h2 + (depth - 1) * 2 * n * n * h2
    bytes_accessed = itemsize * (n * n + n * r + n * h2 + r * h2) + 4 * n * out_w

    kernel = functools.partial(_fused_gnn_kernel, depth=depth, h2=h2)
    return pl.pallas_call(
        kernel,
        out_shape=jax.ShapeDtypeStruct((n, out_w), jnp.float32),
        compiler_params=pltpu.CompilerParams(vmem_limit_bytes=vmem_limit),
        cost_estimate=pl.CostEstimate(
            flops=int(flops), transcendentals=0,
            bytes_accessed=int(bytes_accessed)),
    )(ent_ent, ent_rel, we_pad, wr_pad)


# ---------------------------------------------------------------------------
# Tiled matmul+relu fallback (large graphs that do not fit VMEM wholesale).
# ---------------------------------------------------------------------------
def _mm_relu_kernel(a_ref, b_ref, o_ref):
    # K fits in one block: no accumulator scratch / init / finalize round trip.
    o_ref[...] = jnp.maximum(
        jnp.dot(a_ref[...], b_ref[...], preferred_element_type=jnp.float32),
        0.0).astype(o_ref.dtype)


def _mm_relu_acc_kernel(a_ref, b_ref, o_ref, acc_ref):
    @pl.when(pl.program_id(2) == 0)
    def _init():
        acc_ref[...] = jnp.zeros_like(acc_ref)

    acc_ref[...] += jnp.dot(a_ref[...], b_ref[...],
                            preferred_element_type=jnp.float32)

    @pl.when(pl.program_id(2) == pl.num_programs(2) - 1)
    def _finalize():
        o_ref[...] = jnp.maximum(acc_ref[...], 0.0).astype(o_ref.dtype)


def _pad_to_multiple(x, multiple=128):
    """Zero-pad every dim of x up to a multiple of `multiple` (exact through
    matmul + relu; caller slices the output back)."""
    pads = []
    needs = False
    for s in x.shape:
        rem = (-s) % multiple
        pads.append((0, rem))
        needs = needs or (rem != 0)
    return jnp.pad(x, pads) if needs else x


def _pick_tile(dim, preferred):
    """Largest MXU/HBM-friendly tile that divides `dim` (dim is 128-aligned)."""
    if dim <= preferred:
        return dim
    for t in (1024, 512, 256, 128):
        if t <= preferred and dim % t == 0:
            return t
    return dim


def matmul_relu_tiled(a, b, *, compute_dtype=jnp.float32, vmem_limit=None):
    """relu(a @ b) as a tiled Pallas kernel (large-graph fallback path).

    Irregular dims are zero-padded to multiples of 128 so tiling, pipelining
    and megacore sharding always apply; the result is sliced back."""
    if vmem_limit is None:
        vmem_limit = _vmem_limit_bytes()
    m, k = a.shape
    k2, n = b.shape
    assert k == k2, (a.shape, b.shape)

    a_p = _pad_to_multiple(a.astype(compute_dtype))
    b_p = _pad_to_multiple(b.astype(compute_dtype))
    mp, kp = a_p.shape
    _, np_ = b_p.shape

    pref_mn = 1024 if vmem_limit >= 72 * _MIB else 512   # bigger tiles on v5e/v6e
    tm = _pick_tile(mp, pref_mn)
    tn = _pick_tile(np_, pref_mn)
    tk = _pick_tile(kp, 1024)

    if tk == kp:  # no K split -> skip accumulator scratch entirely
        out = pl.pallas_call(
            _mm_relu_kernel,
            out_shape=jax.ShapeDtypeStruct((mp, np_), jnp.float32),
            grid_spec=pltpu.PrefetchScalarGridSpec(
                num_scalar_prefetch=0,
                grid=(mp // tm, np_ // tn),
                in_specs=[
                    pl.BlockSpec((tm, kp), lambda i, j: (i, 0)),
                    pl.BlockSpec((kp, tn), lambda i, j: (0, j)),
                ],
                out_specs=pl.BlockSpec((tm, tn), lambda i, j: (i, j)),
            ),
            compiler_params=pltpu.CompilerParams(
                dimension_semantics=("parallel", "parallel"),
                vmem_limit_bytes=vmem_limit,
            ),
        )(a_p, b_p)
    else:
        out = pl.pallas_call(
            _mm_relu_acc_kernel,
            out_shape=jax.ShapeDtypeStruct((mp, np_), jnp.float32),
            grid_spec=pltpu.PrefetchScalarGridSpec(
                num_scalar_prefetch=0,
                grid=(mp // tm, np_ // tn, kp // tk),
                in_specs=[
                    pl.BlockSpec((tm, tk), lambda i, j, kk: (i, kk)),
                    pl.BlockSpec((tk, tn), lambda i, j, kk: (kk, j)),
                ],
                out_specs=pl.BlockSpec((tm, tn), lambda i, j, kk: (i, j)),
                scratch_shapes=[pltpu.VMEM((tm, tn), jnp.float32)],
            ),
            compiler_params=pltpu.CompilerParams(
                dimension_semantics=("parallel", "parallel", "arbitrary"),
                vmem_limit_bytes=vmem_limit,
            ),
        )(a_p, b_p)

    if mp != m or np_ != n:
        out = out[:m, :n]
    return out


# ---------------------------------------------------------------------------
# Model wrapper.
# ---------------------------------------------------------------------------
def xavier_uniform(key, shape, dtype=jnp.float32):
    fan_in, fan_out = shape[0], shape[1]
    bound = float(jnp.sqrt(6.0 / (fan_in + fan_out)))
    return jax.random.uniform(key, shape, dtype, minval=-bound, maxval=bound)


class SimpleGNNPallas:
    """JAX/Pallas port of SimpleGNN (eval mode: dropout == identity).

    compute_dtype=jnp.bfloat16 runs the MXU at its bf16 peak (accumulation in
    f32); compute_dtype=jnp.float32 matches the PyTorch reference exactly."""

    def __init__(self, node_size, rel_size, hidden_size, dropout_rate, depth,
                 key, compute_dtype=jnp.float32):
        self.node_size = node_size
        self.rel_size = rel_size
        self.hidden_size = hidden_size
        self.dropout = dropout_rate  # unused in eval mode
        self.depth = depth
        self.compute_dtype = jnp.dtype(compute_dtype)

        k_ent, k_rel = jax.random.split(key)
        self.ent_emb = xavier_uniform(k_ent, (node_size, hidden_size))
        self.rel_emb = xavier_uniform(k_rel, (rel_size, hidden_size))

        # Zero-padded first-layer weights ("block-diagonal" trick):
        #   relu(cat([ee @ E, er @ R], -1)) == relu(ee @ [E|0] + er @ [0|R])
        # -> one 2H-lane-wide first layer, no lane concatenation anywhere.
        h2 = 2 * hidden_size
        self.we_pad = jnp.zeros((node_size, h2), jnp.float32
                                ).at[:, :hidden_size].set(self.ent_emb)
        self.wr_pad = jnp.zeros((rel_size, h2), jnp.float32
                                ).at[:, hidden_size:].set(self.rel_emb)

        # Generation-aware VMEM limits (computed once, eagerly).
        self._vmem_limit = _vmem_limit_bytes()
        self._fused_budget = self._vmem_limit - 4 * _MIB

    def _fused_vmem_bytes(self):
        n, r, d = self.node_size, self.rel_size, self.depth
        h2 = 2 * self.hidden_size
        itemsize = self.compute_dtype.itemsize
        inputs = itemsize * (n * n + n * r + n * h2 + r * h2)  # single-buffered
        out = 4 * n * h2 * d
        work = 4 * n * h2 * 4  # live h (f32) + matmul temps + cast copies
        return inputs + out + work

    @functools.partial(jax.jit, static_argnums=0)
    def forward(self, adj, ent_ent, ent_rel):
        del adj  # unused by the reference forward pass (matches the module)
        cd = self.compute_dtype
        if self._fused_vmem_bytes() <= self._fused_budget:
            # Single fused kernel: everything VMEM-resident, one launch,
            # per-slab lane-dense stores into one output slab.
            return fused_gnn_forward(
                ent_ent.astype(cd), ent_rel.astype(cd),
                self.we_pad.astype(cd), self.wr_pad.astype(cd),
                depth=self.depth, vmem_limit=self._vmem_limit)
        return self._forward_tiled(ent_ent, ent_rel)

    def _forward_tiled(self, ent_ent, ent_rel):
        """Large-graph fallback: tiled fused matmul+relu kernels + one concat."""
        cd = self.compute_dtype
        ee = ent_ent.astype(cd)
        he = matmul_relu_tiled(ee, self.ent_emb, compute_dtype=cd,
                               vmem_limit=self._vmem_limit)            # [N, H]
        hr = matmul_relu_tiled(ent_rel, self.rel_emb, compute_dtype=cd,
                               vmem_limit=self._vmem_limit)            # [N, H]
        h = jnp.concatenate([he, hr], axis=-1)                         # [N, 2H]
        slabs = [h]
        for _ in range(self.depth - 1):
            h = matmul_relu_tiled(ee, h, compute_dtype=cd,
                                  vmem_limit=self._vmem_limit)         # [N, 2H]
            slabs.append(h)
        return jnp.concatenate(slabs, axis=-1)                         # [N, 2H*depth]


def _reference_forward(model, ent_ent, ent_rel):
    """Pure-jnp f32 reference for the correctness check."""
    he = ent_ent @ model.ent_emb
    hr = ent_rel @ model.rel_emb
    h = jax.nn.relu(jnp.concatenate([he, hr], axis=-1))
    hg = h
    for _ in range(model.depth - 1):
        h = jax.nn.relu(ent_ent @ h)
        hg = jnp.concatenate([hg, h], axis=-1)
    return hg


if __name__ == "__main__":
    key = jax.random.PRNGKey(0)
    k_model, k_ee, k_er = jax.random.split(key, 3)

    node_size = 64
    rel_size = 32
    hidden_size = 32
    depth = 3
    dropout_rate = 0.1

    # Deterministic synthetic "graph" inputs (dense row-normalized
    # adjacency-like matrices, as torch.matmul expects in the reference).
    adj = jnp.eye(node_size, dtype=jnp.float32)
    ent_ent = jax.random.uniform(k_ee, (node_size, node_size), jnp.float32)
    ent_ent = ent_ent / jnp.sum(ent_ent, axis=-1, keepdims=True)
    ent_rel = jax.random.uniform(k_er, (node_size, rel_size), jnp.float32)
    ent_rel = ent_rel / jnp.sum(ent_rel, axis=-1, keepdims=True)

    # --- Exact-semantics (f32) fused kernel path ---------------------------
    model_f32 = SimpleGNNPallas(node_size, rel_size, hidden_size, dropout_rate,
                                depth, k_model, compute_dtype=jnp.float32)
    out = jax.block_until_ready(model_f32.forward(adj, ent_ent, ent_rel))
    ref = _reference_forward(model_f32, ent_ent, ent_rel)
    assert out.shape == (node_size, 2 * hidden_size * depth), out.shape
    assert jnp.allclose(out, ref, atol=1e-4, rtol=1e-4), "fused f32 mismatch"

    # --- bf16 MXU-operand path (f32 accumulation) ---------------------------
    model_bf16 = SimpleGNNPallas(node_size, rel_size, hidden_size, dropout_rate,
                                 depth, k_model, compute_dtype=jnp.bfloat16)
    out_bf16 = jax.block_until_ready(model_bf16.forward(adj, ent_ent, ent_rel))
    assert out_bf16.shape == out.shape, out_bf16.shape
    assert jnp.allclose(out_bf16, ref, atol=1e-2, rtol=5e-2), "fused bf16 mismatch"

    # --- Large-graph tiled fallback (exercised once for coverage) ----------
    out_tiled = jax.block_until_ready(
        jax.jit(model_f32._forward_tiled)(ent_ent, ent_rel))
    assert out_tiled.shape == out.shape, out_tiled.shape
    assert jnp.allclose(out_tiled, ref, atol=1e-4, rtol=1e-4), "tiled path mismatch"

    print("KERNEL_OK")
</pallas_src>

<mosaic_0001>
module attributes {stable_mosaic.version = 11 : i64} {
  func.func @_fused_gnn_kernel(%arg0: memref<64x64xf32, #tpu.memory_space<vmem>>, %arg1: memref<64x32xf32, #tpu.memory_space<vmem>>, %arg2: memref<64x64xf32, #tpu.memory_space<vmem>>, %arg3: memref<32x64xf32, #tpu.memory_space<vmem>>, %arg4: memref<64x192xf32, #tpu.memory_space<vmem>>) attributes {dimension_semantics = [], scalar_prefetch = 0 : i64, scratch_operands = 0 : i64, tpu.core_type = #tpu.core_type<tc>} {
    %c0 = arith.constant 0 : index
    %c0_0 = arith.constant 0 : index
    %0 = vector.load %arg0[%c0, %c0_0] : memref<64x64xf32, #tpu.memory_space<vmem>>, vector<64x64xf32>
    %c0_1 = arith.constant 0 : index
    %c0_2 = arith.constant 0 : index
    %1 = vector.load %arg2[%c0_1, %c0_2] : memref<64x64xf32, #tpu.memory_space<vmem>>, vector<64x64xf32>
    %cst = arith.constant dense<0.000000e+00> : vector<64x64xf32>
    %2 = tpu.matmul %0, %1, %cst {dimension_numbers = #tpu.dot_dimension_numbers<[1], [0], [0], [1], [0, 0, 1, 1], [], []>} : vector<64x64xf32>, vector<64x64xf32>, vector<64x64xf32> -> vector<64x64xf32>
    %c0_3 = arith.constant 0 : index
    %c0_4 = arith.constant 0 : index
    %3 = vector.load %arg1[%c0_3, %c0_4] : memref<64x32xf32, #tpu.memory_space<vmem>>, vector<64x32xf32>
    %c0_5 = arith.constant 0 : index
    %c0_6 = arith.constant 0 : index
    %4 = vector.load %arg3[%c0_5, %c0_6] : memref<32x64xf32, #tpu.memory_space<vmem>>, vector<32x64xf32>
    %cst_7 = arith.constant dense<0.000000e+00> : vector<64x64xf32>
    %5 = tpu.matmul %3, %4, %cst_7 {dimension_numbers = #tpu.dot_dimension_numbers<[1], [0], [0], [1], [0, 0, 1, 1], [], []>} : vector<64x32xf32>, vector<32x64xf32>, vector<64x64xf32> -> vector<64x64xf32>
    %6 = arith.addf %2, %5 : vector<64x64xf32>
    %cst_8 = arith.constant 0.000000e+00 : f32
    %7 = vector.broadcast %cst_8 : f32 to vector<64x64xf32>
    %8 = arith.maximumf %6, %7 : vector<64x64xf32>
    %c0_9 = arith.constant 0 : index
    %c0_10 = arith.constant 0 : index
    %9 = vector.load %arg4[%c0_9, %c0_10] : memref<64x192xf32, #tpu.memory_space<vmem>>, vector<64x64xf32>
    tpu.vector_store %arg4[%c0_9, %c0_10], %8 {strides = array<i32>} : memref<64x192xf32, #tpu.memory_space<vmem>>, vector<64x64xf32>,
    %cst_11 = arith.constant dense<0.000000e+00> : vector<64x64xf32>
    %10 = tpu.matmul %0, %8, %cst_11 {dimension_numbers = #tpu.dot_dimension_numbers<[1], [0], [0], [1], [0, 0, 1, 1], [], []>} : vector<64x64xf32>, vector<64x64xf32>, vector<64x64xf32> -> vector<64x64xf32>
    %cst_12 = arith.constant 0.000000e+00 : f32
    %11 = vector.broadcast %cst_12 : f32 to vector<64x64xf32>
    %12 = arith.maximumf %10, %11 : vector<64x64xf32>
    %c0_13 = arith.constant 0 : index
    %c64 = arith.constant 64 : index
    %13 = vector.load %arg4[%c0_13, %c64] : memref<64x192xf32, #tpu.memory_space<vmem>>, vector<64x64xf32>
    tpu.vector_store %arg4[%c0_13, %c64], %12 {strides = array<i32>} : memref<64x192xf32, #tpu.memory_space<vmem>>, vector<64x64xf32>,
    %cst_14 = arith.constant dense<0.000000e+00> : vector<64x64xf32>
    %14 = tpu.matmul %0, %12, %cst_14 {dimension_numbers = #tpu.dot_dimension_numbers<[1], [0], [0], [1], [0, 0, 1, 1], [], []>} : vector<64x64xf32>, vector<64x64xf32>, vector<64x64xf32> -> vector<64x64xf32>
    %cst_15 = arith.constant 0.000000e+00 : f32
    %15 = vector.broadcast %cst_15 : f32 to vector<64x64xf32>
    %16 = arith.maximumf %14, %15 : vector<64x64xf32>
    %c0_16 = arith.constant 0 : index
    %c128 = arith.constant 128 : index
    %17 = vector.load %arg4[%c0_16, %c128] : memref<64x192xf32, #tpu.memory_space<vmem>>, vector<64x64xf32>
    tpu.vector_store %arg4[%c0_16, %c128], %16 {strides = array<i32>} : memref<64x192xf32, #tpu.memory_space<vmem>>, vector<64x64xf32>,
    return
  }
}

</mosaic_0001>

<bundles_post_ra>
// kernel: forward.1
= control target key start
LH: loop header
LB: loop body
LE: loop exit
PB: predicated region body
PF: predicated region fallthrough
CT: control target
= control target key end

     0   :  { %9 = vsyncpa [#allocation3], 0  ;;  %s661_s0 = inlined_call_operand.vmem [shape: f32[64,64], index: 0, kind: input, shape index: {}]   ;;  %s662_s1 = inlined_call_operand.vmem [shape: f32[64,32], index: 1, kind: input, shape index: {}]   ;;  %s663_s2 = inlined_call_operand.hbm [shape: f32[64,64], index: 2, kind: input, shape index: {}]   ;;  %s664_s3 = inlined_call_operand.vmem [shape: f32[32,64], index: 3, kind: input, shape index: {}]   ;;  %s665_s4 = inlined_call_operand.hbm [shape: f32[64,192], index: 4, kind: output, shape index: {}]  }
   0x1   :  { %10 = vsyncpa [#allocation4], 0  ;;  %s19_s17 = sshll.u32 %s663_s2, 4  ;;  %s467_s18 = smov [#allocation2]   ;;  %s20_s17 = int_to_ptr.hbm [resolvable:$true] %s19_s17 }
   0x2   :  { %s21_s19 = sshll.u32 %s467_s18, 4  ;;  %s468_s20 = smov 128   ;;  %s22_s19 = int_to_ptr.vmem [resolvable:$true] %s21_s19 }
   0x3   :  { %s469_s21 = smov 8  }
   0x4   :  { %27 = dma.hbm_to_vmem [thread:$0]  %s20_s17, 1024, %s22_s19, [#allocation3], %s468_s20, %s468_s20, %s469_s21  }
   0x5   :  { %463 = dma.done.wait [#allocation3], 1024  }
   0x6   :  { %464 = vsyncadd [#allocation3], 4294966272  ;;  %v49_v0 = vld [vmem:[#allocation2 + $0x38] sm:$0xff]  ;;  %v48_v1 = vld [vmem:[#allocation2 + $0x30] sm:$0xff]  ;;  %vm62_vm0 = vcmask 261120   ;;  %vm128_vm1 = vcmask 523264  }
   0x7   :  { %161 = vmatpush.msra.mxu1 %v49_v0  ;;  %v61_v2 = vld [vmem:[%s664_s3 + $0x18] sm:$0xff]  ;;  %v47_v3 = vld [vmem:[#allocation2 + $0x28] sm:$0xff]  ;;  %v60_v4 = vld [vmem:[%s664_s3 + $0x10] sm:$0xff]  ;;  %vm291_vm2 = vcmask 1048064   ;;  %s363_s9 = sshll.u32 %s665_s4, 4  ;;  %s472_s10 = smov 256   ;;  %s364_s9 = int_to_ptr.hbm [resolvable:$true] %s363_s9 }
   0x8   :  { %99 = vmatpush.msra.mxu0 %v61_v2  ;;  %v59_v5 = vld [vmem:[%s664_s3 + $0x8] sm:$0xff]  ;;  %v46_v6 = vld [vmem:[#allocation2 + $0x20] sm:$0xff]  ;;  %v45_v8 = vld [vmem:[#allocation2 + $0x18] sm:$0xff]  ;;  %s473_s11 = smov 16  }
   0x9   :  { %162 = vmatpush.msra.mxu1 %v48_v1  ;;  %v58_v7 = vld [vmem:[%s664_s3] sm:$0xff]  ;;  %v44_v10 = vld [vmem:[#allocation2 + $0x10] sm:$0xff]  ;;  %v43_v11 = vld [vmem:[#allocation2 + $0x8] sm:$0xff] }
   0xa   :  { %100 = vmatpush.msra.mxu0 %v60_v4  ;;  %v50_v9 = vld [vmem:[%s662_s1] sm:$0xff]  ;;  %v51_v14 = vld [vmem:[%s662_s1 + $0x8] sm:$0xff]  ;;  %v52_v16 = vld [vmem:[%s662_s1 + $0x10] sm:$0xff] }
   0xb   :  { %163 = vmatpush.msra.mxu1 %v47_v3  ;;  %v42_v12 = vld [vmem:[#allocation2] sm:$0xff]  ;;  %v532_v15 = vld [vmem:[%s661_s0 + $0x8] sm:$0xff]  ;;  %v543_v17 = vld [vmem:[%s661_s0 + $0x10] sm:$0xff] }
   0xc   :  { %101 = vmatpush.msra.mxu0 %v59_v5  ;;  %v521_v13 = vld [vmem:[%s661_s0] sm:$0xff]  ;;  %v53_v18 = vld [vmem:[%s662_s1 + $0x18] sm:$0xff]  ;;  %v55_v22 = vld [vmem:[%s662_s1 + $0x28] sm:$0xff] }
   0xd   :  { %164 = vmatpush.msra.mxu1 %v46_v6  ;;  %v554_v19 = vld [vmem:[%s661_s0 + $0x18] sm:$0xff]  ;;  %v54_v20 = vld [vmem:[%s662_s1 + $0x20] sm:$0xff]  ;;  %v576_v23 = vld [vmem:[%s661_s0 + $0x28] sm:$0xff] }
   0xe   :  { %102 = vmatpush.msra.mxu0 %v58_v7  ;;  %v565_v21 = vld [vmem:[%s661_s0 + $0x20] sm:$0xff]  ;;  %v56_v24 = vld [vmem:[%s662_s1 + $0x30] sm:$0xff]  ;;  %v57_v26 = vld [vmem:[%s662_s1 + $0x38] sm:$0xff]  ;;  %s471_s1 = smov [#allocation5]  }
   0xf   :  { %165 = vmatpush.msra.mxu1 %v45_v8  ;;  %376 = vmatmul.msk.f32.vlgmr.msra.gmra.mxu0 %vm62_vm0, %v50_v9  ;;  %v587_v25 = vld [vmem:[%s661_s0 + $0x30] sm:$0xff]  ;;  %v598_v27 = vld [vmem:[%s661_s0 + $0x38] sm:$0xff]  ;;  %s470_s0 = smov 64   ;;  %s361_s3 = sshll.u32 %s471_s1, 4  ;;  %s362_s3 = int_to_ptr.vmem [resolvable:$true] %s361_s3 }
  0x11   :  { %166 = vmatpush.msra.mxu1 %v44_v10 }
  0x13   :  { %167 = vmatpush.msra.mxu1 %v43_v11 }
  0x15   :  { %168 = vmatpush.msra.mxu1 %v42_v12 }
  0x16   :  { %384 = vmatmul.msk.f32.vlgmr.msra.gmra.mxu1 %vm128_vm1, %v521_v13 }
  0x17   :  { %377 = vmatmul.msk.f32.gmra.mxu0 %vm62_vm0, %v51_v14 }
  0x1e   :  { %385 = vmatmul.msk.f32.gmra.mxu1 %vm128_vm1, %v532_v15 }
  0x1f   :  { %378 = vmatmul.msk.f32.gmra.mxu0 %vm62_vm0, %v52_v16 }
  0x26   :  { %386 = vmatmul.msk.f32.gmra.mxu1 %vm128_vm1, %v543_v17 }
  0x27   :  { %379 = vmatmul.msk.f32.gmra.mxu0 %vm62_vm0, %v53_v18 }
  0x2e   :  { %387 = vmatmul.msk.f32.gmra.mxu1 %vm128_vm1, %v554_v19 }
  0x2f   :  { %380 = vmatmul.msk.f32.gmra.mxu0 %vm62_vm0, %v54_v20 }
  0x36   :  { %388 = vmatmul.msk.f32.gmra.mxu1 %vm128_vm1, %v565_v21 }
  0x37   :  { %381 = vmatmul.msk.f32.gmra.mxu0 %vm62_vm0, %v55_v22 }
  0x3e   :  { %389 = vmatmul.msk.f32.gmra.mxu1 %vm128_vm1, %v576_v23 }
  0x3f   :  { %382 = vmatmul.msk.f32.gmra.mxu0 %vm62_vm0, %v56_v24 }
  0x46   :  { %390 = vmatmul.msk.f32.gmra.mxu1 %vm128_vm1, %v587_v25 }
  0x47   :  { %383 = vmatmul.msk.f32.gmra.mxu0 %vm62_vm0, %v57_v26 }
  0x4e   :  { %391 = vmatmul.msk.f32.gmra.mxu1 %vm128_vm1, %v598_v27 }
  0x8c   :  { %v104_v28 = vpop.f32.mrf.mxu0 }
  0x93   :  { %v170_v29 = vpop.f32.mrf.mxu1 }
  0x94   :  { %v171_v30 = vadd.f32 %v170_v29, %v104_v28  ;;  %v107_v31 = vpop.f32.mrf.mxu0 }
  0x96   :  { %v194_v32 = vmax.f32 %v171_v30, 0.0 }
  0x98   :  { %202 = vst.msk [vmem:[#allocation5] sm:$0xff] %vm128_vm1, %v194_v32 }
  0x9b   :  { %v173_v33 = vpop.f32.mrf.mxu1 }
  0x9c   :  { %v174_v34 = vadd.f32 %v173_v33, %v107_v31  ;;  %v110_v35 = vpop.f32.mrf.mxu0 }
  0x9e   :  { %v195_v36 = vmax.f32 %v174_v34, 0.0 }
  0xa0   :  { %203 = vst.msk [vmem:[#allocation5 + $0x10] sm:$0xff] %vm128_vm1, %v195_v36 }
  0xa3   :  { %v176_v37 = vpop.f32.mrf.mxu1 }
  0xa4   :  { %v177_v38 = vadd.f32 %v176_v37, %v110_v35  ;;  %v113_v39 = vpop.f32.mrf.mxu0 }
  0xa6   :  { %v196_v40 = vmax.f32 %v177_v38, 0.0 }
  0xa8   :  { %204 = vst.msk [vmem:[#allocation5 + $0x20] sm:$0xff] %vm128_vm1, %v196_v40 }
  0xab   :  { %v179_v41 = vpop.f32.mrf.mxu1 }
  0xac   :  { %v180_v42 = vadd.f32 %v179_v41, %v113_v39  ;;  %v116_v43 = vpop.f32.mrf.mxu0 }
  0xae   :  { %v197_v44 = vmax.f32 %v180_v42, 0.0 }
  0xb0   :  { %205 = vst.msk [vmem:[#allocation5 + $0x30] sm:$0xff] %vm128_vm1, %v197_v44 }
  0xb3   :  { %v182_v45 = vpop.f32.mrf.mxu1 }
  0xb4   :  { %v183_v46 = vadd.f32 %v182_v45, %v116_v43  ;;  %v119_v47 = vpop.f32.mrf.mxu0 }
  0xb6   :  { %v198_v48 = vmax.f32 %v183_v46, 0.0 }
  0xb8   :  { %206 = vst.msk [vmem:[#allocation5 + $0x40] sm:$0xff] %vm128_vm1, %v198_v48 }
  0xbb   :  { %v185_v49 = vpop.f32.mrf.mxu1 }
  0xbc   :  { %v186_v50 = vadd.f32 %v185_v49, %v119_v47  ;;  %v122_v52 = vpop.f32.mrf.mxu0 }
  0xbe   :  { %v199_v51 = vmax.f32 %v186_v50, 0.0 }
  0xc0   :  { %207 = vst.msk [vmem:[#allocation5 + $0x50] sm:$0xff] %vm128_vm1, %v199_v51 }
  0xc3   :  { %v188_v53 = vpop.f32.mrf.mxu1 }
  0xc4   :  { %v189_v54 = vadd.f32 %v188_v53, %v122_v52  ;;  %v125_v56 = vpop.f32.mrf.mxu0 }
  0xc6   :  { %v200_v55 = vmax.f32 %v189_v54, 0.0 }
  0xc8   :  { %208 = vst.msk [vmem:[#allocation5 + $0x60] sm:$0xff] %vm128_vm1, %v200_v55 }
  0xcb   :  { %v191_v57 = vpop.f32.mrf.mxu1 }
  0xcc   :  { %v192_v58 = vadd.f32 %v191_v57, %v125_v56 }
  0xce   :  { %v201_v59 = vmax.f32 %v192_v58, 0.0 }
  0xd0   :  { %209 = vst.msk [vmem:[#allocation5 + $0x70] sm:$0xff] %vm128_vm1, %v201_v59  ;;  %218 = vmatpush.msra.mxu2 %v201_v59 }
  0xd2   :  { %219 = vmatpush.msra.mxu2 %v200_v55 }
  0xd4   :  { %220 = vmatpush.msra.mxu2 %v199_v51 }
  0xd6   :  { %221 = vmatpush.msra.mxu2 %v198_v48 }
  0xd8   :  { %222 = vmatpush.msra.mxu2 %v197_v44 }
  0xda   :  { %223 = vmatpush.msra.mxu2 %v196_v40 }
  0xdc   :  { %224 = vmatpush.msra.mxu2 %v195_v36 }
  0xde   :  { %225 = vmatpush.msra.mxu2 %v194_v32 }
  0xdf   :  { %392 = vmatmul.msk.f32.vlgmr.msra.gmra.mxu2 %vm128_vm1, %v521_v13 }
  0xe7   :  { %393 = vmatmul.msk.f32.gmra.mxu2 %vm128_vm1, %v532_v15 }
  0xef   :  { %394 = vmatmul.msk.f32.gmra.mxu2 %vm128_vm1, %v543_v17 }
  0xf7   :  { %395 = vmatmul.msk.f32.gmra.mxu2 %vm128_vm1, %v554_v19 }
  0xff   :  { %396 = vmatmul.msk.f32.gmra.mxu2 %vm128_vm1, %v565_v21 }
 0x107   :  { %397 = vmatmul.msk.f32.gmra.mxu2 %vm128_vm1, %v576_v23 }
 0x10f   :  { %398 = vmatmul.msk.f32.gmra.mxu2 %vm128_vm1, %v587_v25 }
 0x117   :  { %399 = vmatmul.msk.f32.gmra.mxu2 %vm128_vm1, %v598_v27 }
 0x162   :  { %v227_v60 = vpop.f32.mrf.mxu2 }
 0x163   :  { %v251_v61 = vmax.f32 %v227_v60, 0.0 }
 0x165   :  { %267 = vrot.lane.b32.xlu0 %v251_v61, %s470_s0 }
 0x16a   :  { %v230_v62 = vpop.f32.mrf.mxu2 }
 0x16b   :  { %v252_v63 = vmax.f32 %v230_v62, 0.0 }
 0x16d   :  { %269 = vrot.lane.b32.xlu0 %v252_v63, %s470_s0 }
 0x172   :  { %v233_v0 = vpop.f32.mrf.mxu2 }
 0x173   :  { %v253_v1 = vmax.f32 %v233_v0, 0.0 }
 0x175   :  { %271 = vrot.lane.b32.xlu1 %v253_v1, %s470_s0 }
 0x17a   :  { %v236_v2 = vpop.f32.mrf.mxu2 }
 0x17b   :  { %v254_v3 = vmax.f32 %v236_v2, 0.0 }
 0x17d   :  { %273 = vrot.lane.b32.xlu1 %v254_v3, %s470_s0 }
 0x182   :  { %v239_v4 = vpop.f32.mrf.mxu2 }
 0x183   :  { %v255_v5 = vmax.f32 %v239_v4, 0.0 }
 0x185   :  { %275 = vrot.lane.b32.xlu2 %v255_v5, %s470_s0 }
 0x18a   :  { %v242_v6 = vpop.f32.mrf.mxu2 }
 0x18b   :  { %v256_v7 = vmax.f32 %v242_v6, 0.0 }
 0x18d   :  { %277 = vrot.lane.b32.xlu2 %v256_v7, %s470_s0 }
 0x192   :  { %v245_v8 = vpop.f32.mrf.mxu2 }
 0x193   :  { %v257_v9 = vmax.f32 %v245_v8, 0.0 }
 0x195   :  { %279 = vrot.lane.b32.xlu0 %v257_v9, %s470_s0 }
 0x19a   :  { %v248_v10 = vpop.f32.mrf.mxu2 }
 0x19b   :  { %v258_v11 = vmax.f32 %v248_v10, 0.0 }
 0x19d   :  { %281 = vrot.lane.b32.xlu1 %v258_v11, %s470_s0  ;;  %308 = vmatpush.msra.mxu3 %v258_v11 }
 0x19f   :  { %309 = vmatpush.msra.mxu3 %v257_v9 }
 0x1a1   :  { %310 = vmatpush.msra.mxu3 %v256_v7 }
 0x1a3   :  { %311 = vmatpush.msra.mxu3 %v255_v5 }
 0x1a5   :  { %312 = vmatpush.msra.mxu3 %v254_v3 }
 0x1a7   :  { %313 = vmatpush.msra.mxu3 %v253_v1 }
 0x1a9   :  { %314 = vmatpush.msra.mxu3 %v252_v63 }
 0x1ab   :  { %315 = vmatpush.msra.mxu3 %v251_v61 }
 0x1ac   :  { %400 = vmatmul.msk.f32.vlgmr.msra.gmra.mxu3 %vm128_vm1, %v521_v13 }
 0x1b4   :  { %401 = vmatmul.msk.f32.gmra.mxu3 %vm128_vm1, %v532_v15 }
 0x1bc   :  { %402 = vmatmul.msk.f32.gmra.mxu3 %vm128_vm1, %v543_v17 }
 0x1c4   :  { %403 = vmatmul.msk.f32.gmra.mxu3 %vm128_vm1, %v554_v19 }
 0x1cc   :  { %404 = vmatmul.msk.f32.gmra.mxu3 %vm128_vm1, %v565_v21 }
 0x1d4   :  { %405 = vmatmul.msk.f32.gmra.mxu3 %vm128_vm1, %v576_v23 }
 0x1d7   :  { %v268_v12 = vpop.permute.xlu0 %267 }
 0x1d8   :  { %292 = vst.msk [vmem:[#allocation5] sm:$0xff] %vm291_vm2, %v268_v12 }
 0x1dc   :  { %406 = vmatmul.msk.f32.gmra.mxu3 %vm128_vm1, %v587_v25 }
 0x1df   :  { %v270_v13 = vpop.permute.xlu0 %269  ;;  %v276_v14 = vpop.permute.xlu2 %275 }
 0x1e0   :  { %293 = vst.msk [vmem:[#allocation5 + $0x10] sm:$0xff] %vm291_vm2, %v270_v13 }
 0x1e1   :  { %296 = vst.msk [vmem:[#allocation5 + $0x40] sm:$0xff] %vm291_vm2, %v276_v14 }
 0x1e4   :  { %407 = vmatmul.msk.f32.gmra.mxu3 %vm128_vm1, %v598_v27 }
 0x1e7   :  { %v272_v15 = vpop.permute.xlu1 %271  ;;  %v278_v16 = vpop.permute.xlu2 %277 }
 0x1e8   :  { %294 = vst.msk [vmem:[#allocation5 + $0x20] sm:$0xff] %vm291_vm2, %v272_v15 }
 0x1e9   :  { %297 = vst.msk [vmem:[#allocation5 + $0x50] sm:$0xff] %vm291_vm2, %v278_v16 }
 0x1ef   :  { %v274_v17 = vpop.permute.xlu1 %273 }
 0x1f0   :  { %295 = vst.msk [vmem:[#allocation5 + $0x30] sm:$0xff] %vm291_vm2, %v274_v17 }
 0x207   :  { %v280_v18 = vpop.permute.xlu0 %279 }
 0x208   :  { %298 = vst.msk [vmem:[#allocation5 + $0x60] sm:$0xff] %vm291_vm2, %v280_v18 }
 0x20f   :  { %v282_v19 = vpop.permute.xlu1 %281 }
 0x210   :  { %299 = vst.msk [vmem:[#allocation5 + $0x70] sm:$0xff] %vm291_vm2, %v282_v19 }
 0x22f   :  { %v317_v20 = vpop.f32.mrf.mxu3 }
 0x230   :  { %v341_v21 = vmax.f32 %v317_v20, 0.0 }
 0x232   :  { %349 = vst.msk [vmem:[#allocation5 + $0x8] sm:$0xff] %vm128_vm1, %v341_v21 }
 0x237   :  { %v320_v22 = vpop.f32.mrf.mxu3 }
 0x238   :  { %v342_v23 = vmax.f32 %v320_v22, 0.0 }
 0x23a   :  { %350 = vst.msk [vmem:[#allocation5 + $0x18] sm:$0xff] %vm128_vm1, %v342_v23 }
 0x23f   :  { %v323_v24 = vpop.f32.mrf.mxu3 }
 0x240   :  { %v343_v25 = vmax.f32 %v323_v24, 0.0 }
 0x242   :  { %351 = vst.msk [vmem:[#allocation5 + $0x28] sm:$0xff] %vm128_vm1, %v343_v25 }
 0x247   :  { %v326_v26 = vpop.f32.mrf.mxu3 }
 0x248   :  { %v344_v27 = vmax.f32 %v326_v26, 0.0 }
 0x24a   :  { %352 = vst.msk [vmem:[#allocation5 + $0x38] sm:$0xff] %vm128_vm1, %v344_v27 }
 0x24f   :  { %v329_v28 = vpop.f32.mrf.mxu3 }
 0x250   :  { %v345_v29 = vmax.f32 %v329_v28, 0.0 }
 0x252   :  { %353 = vst.msk [vmem:[#allocation5 + $0x48] sm:$0xff] %vm128_vm1, %v345_v29 }
 0x257   :  { %v332_v30 = vpop.f32.mrf.mxu3 }
 0x258   :  { %v346_v31 = vmax.f32 %v332_v30, 0.0 }
 0x25a   :  { %354 = vst.msk [vmem:[#allocation5 + $0x58] sm:$0xff] %vm128_vm1, %v346_v31 }
 0x25f   :  { %v335_v32 = vpop.f32.mrf.mxu3 }
 0x260   :  { %v347_v33 = vmax.f32 %v335_v32, 0.0 }
 0x262   :  { %355 = vst.msk [vmem:[#allocation5 + $0x68] sm:$0xff] %vm128_vm1, %v347_v33 }
 0x267   :  { %v338_v34 = vpop.f32.mrf.mxu3 }
 0x268   :  { %v348_v35 = vmax.f32 %v338_v34, 0.0 }
 0x26a   :  { %356 = vst.msk [vmem:[#allocation5 + $0x78] sm:$0xff] %vm128_vm1, %v348_v35 }
 0x26b   :  { %369 = dma.vmem_to_hbm [thread:$0]  %s362_s3, 2048, %s364_s9, [#allocation4], %s472_s10, %s472_s10, %s473_s11  }
 0x26c   :  { %465 = dma.done.wait [#allocation4], 2048  }
 0x26d   :  { %466 = vsyncadd [#allocation4], 4294965248 }
 0x26e   :  { %374 = vsyncpa [#allocation3], 1 }
 0x26f   :  { %375 = vsyncpa [#allocation4], 1 }

</bundles_post_ra>
